<compile_context>
chip_gen: v7x
topology: tpu7x:2x2x1
jax: 0.10.0
libtpu: 0.0.40
codegen_flags: <defaults>
</compile_context>

<pallas_src>
import functools

import jax
import jax.numpy as jnp
import numpy as np
from jax import lax
from jax.experimental import pallas as pl
from jax.experimental.pallas import tpu as pltpu

K = 3            # temporal kernel size
PAD = K // 2     # padding = kernel_size // 2
BN_EPS = 1e-5    # PyTorch BatchNorm2d default eps


def temporal_branch_kernel(x_ref, w1_ref, w2_ref, b1_ref, b2_ref, o_ref):
    """One row tile: (B_TILE, C_in*T) -> (B_TILE, C_out*T).

    conv_{1xK} == x @ W1_big (banded, BN1 scale pre-folded),
    conv1x1    == h @ W2_big (block-diagonal, BN2 scale pre-folded);
    only the BN shifts and ReLU remain as f32 elementwise work.
    """
    x = x_ref[...]                                                    # bf16
    h = jnp.dot(x, w1_ref[...], preferred_element_type=jnp.float32)   # MXU, f32 acc
    h = jnp.maximum(h + b1_ref[...], 0.0)                             # BN1 shift + ReLU
    h = h.astype(w2_ref.dtype)                                        # bf16 for MXU
    y = jnp.dot(h, w2_ref[...], preferred_element_type=jnp.float32)   # MXU, f32 acc
    y = jnp.maximum(y + b2_ref[...], 0.0)                             # BN2 shift + ReLU
    # Dropout2d is identity at inference; residual branches are zero for t_mode=1.
    o_ref[...] = y.astype(o_ref.dtype)                                # bf16 writeback


def temporal_branch_forward(x_nchw, params, *, rows_per_tile=1024):
    """x_nchw: (N, C_in, H, T) float32.  Returns ((N, C_out, H, T) f32, None)."""
    w1_big, w2_big, b1b, b2b = params
    N, C, H, T = x_nchw.shape
    ci_t = C * T
    co_t = w2_big.shape[1]
    c_out = co_t // T
    assert w1_big.shape == (ci_t, ci_t)
    assert ci_t % 128 == 0 and co_t % 128 == 0, (
        "lane-dense path requires C_in*T and C_out*T to be multiples of 128")
    # TODO(synk): add a zero-column padding path for C*T not a multiple of 128.

    # NCHW -> (N*H, C*T).  For the SGN temporal branch H == 1, so this transpose only
    # moves a size-1 axis (free); for H != 1 it is a real HBM transpose.
    x2d = jnp.transpose(x_nchw, (0, 2, 1, 3)).reshape(N * H, ci_t)
    x2d = x2d.astype(jnp.bfloat16)                 # bf16 HBM<->VMEM traffic

    rows_per_tile = max(8, (rows_per_tile // 8) * 8)
    nb = N * H
    if nb < 16:
        bt, nb_pad = nb, nb                        # single tile == full row dim
    else:
        # >= 2 grid steps (v7x megacore gets both TCs busy), tiles multiple of 8 rows.
        half = ((-(-nb // 2)) + 7) // 8 * 8        # ceil(nb/2) rounded up to 8
        bt = min(rows_per_tile, half)
        nb_pad = pl.cdiv(nb, bt) * bt
        if nb_pad != nb:
            x2d = jnp.pad(x2d, ((0, nb_pad - nb), (0, 0)))

    flops = 2 * nb_pad * (ci_t * ci_t + ci_t * co_t)
    bytes_accessed = (nb_pad * ci_t * 2 + ci_t * ci_t * 2 + ci_t * co_t * 2
                      + (ci_t + co_t) * 4 + nb_pad * co_t * 2)

    # Double-buffered VMEM footprint estimate; raise the scoped limit only if needed.
    # TODO(synk): mark constant-index weight blocks single-buffered (pl.Buffered(1))
    # on v7x once buffer_count=1 is confirmed supported in the target JAX build.
    vmem_est = (2 * bt * ci_t * 2 + 2 * ci_t * ci_t * 2 + 2 * ci_t * co_t * 2
                + 4 * (ci_t + co_t) * 4 + 2 * bt * co_t * 2)
    vmem_limit = None
    if vmem_est > 14 * 1024 * 1024:
        vmem_limit = min(int(vmem_est * 5 // 4), 60 * 1024 * 1024)

    out2d = pl.pallas_call(
        temporal_branch_kernel,
        out_shape=jax.ShapeDtypeStruct((nb_pad, co_t), jnp.bfloat16),
        grid=(nb_pad // bt,),
        in_specs=[
            pl.BlockSpec((bt, ci_t), lambda i: (i, 0)),      # activation rows
            pl.BlockSpec((ci_t, ci_t), lambda i: (0, 0)),    # W1_big * s1 (resident)
            pl.BlockSpec((ci_t, co_t), lambda i: (0, 0)),    # W2_big * s2 (resident)
            pl.BlockSpec((1, ci_t), lambda i: (0, 0)),       # BN1 shift
            pl.BlockSpec((1, co_t), lambda i: (0, 0)),       # BN2 shift
        ],
        out_specs=pl.BlockSpec((bt, co_t), lambda i: (i, 0)),
        compiler_params=pltpu.CompilerParams(
            dimension_semantics=("parallel",),               # v7x: shard over 2 TCs
            vmem_limit_bytes=vmem_limit),
        cost_estimate=pl.CostEstimate(flops=flops, transcendentals=0,
                                      bytes_accessed=bytes_accessed),
    )(x2d, w1_big, w2_big, b1b, b2b)

    out2d = out2d[:nb].astype(jnp.float32)                   # back to module dtype
    y = jnp.transpose(out2d.reshape(N, H, c_out, T), (0, 2, 1, 3))   # back to NCHW
    return y, None                                                   # (x, attn_list)


def fold_params(w1, w2, bn1, bn2, T):
    """Fold PyTorch conv/BN params into the kernel's big-matmul form.

    BN scales are folded into the weight COLUMNS (ReLU prevents folding the shifts).
    W1_big/W2_big are (C*T)^2-sized: a few hundred KiB at SGN temporal-branch shapes,
    held VMEM-resident across grid steps.  (For much larger C*T, switch to per-tap /
    true-C_in-contraction matmuls instead of this big-weight formulation.)
    """
    c1o, c1i, kh, kw = w1.shape
    c2o, c2i = w2.shape[0], w2.shape[1]
    assert kh == 1 and kw == K and c1o == c1i == c2i

    # --- conv_{1xK} (zero padding) as a banded (C_in*T, C_in*T) matrix -------
    # W1_big[ci*T + tin, co*T + tout] = w1[co, ci, 0, tin - tout + PAD]  (if valid)
    tin = jnp.arange(T)[:, None]
    tout = jnp.arange(T)[None, :]
    dk = tin - tout + PAD                                       # (T, T)
    valid = ((dk >= 0) & (dk < K)).astype(w1.dtype)
    w1_taps = jnp.transpose(w1[:, :, 0, :], (2, 1, 0))          # (K, C_in, C_out)
    w1_sel = w1_taps[jnp.clip(dk, 0, K - 1)] * valid[:, :, None, None]  # (T,T,Ci,Co)
    w1_big = jnp.transpose(w1_sel, (2, 0, 3, 1)).reshape(c1i * T, c1o * T)

    # --- conv1x1 as a block-diagonal (C_in*T, C_out*T) matrix ----------------
    w2_big = jnp.einsum('oi,tu->itou', w2[:, :, 0, 0],
                        jnp.eye(T, dtype=w2.dtype)).reshape(c2i * T, c2o * T)

    # --- BatchNorm2d (eval): per-channel scale/shift, tiled channel-major ----
    def fold(g, b, mu, var):
        s = g / jnp.sqrt(var + BN_EPS)
        sh = b - mu * s
        return jnp.repeat(s, T), jnp.repeat(sh, T)              # (C*T,) each

    s1, b1 = fold(*bn1)
    s2, b2 = fold(*bn2)

    # Fold BN scales into the output columns of the matmul weights.
    w1_big = w1_big * s1[None, :]
    w2_big = w2_big * s2[None, :]

    return (w1_big.astype(jnp.bfloat16), w2_big.astype(jnp.bfloat16),
            b1[None, :].astype(jnp.float32), b2[None, :].astype(jnp.float32))


def init_params(key, c_in, c_out):
    ks = jax.random.split(key, 10)
    # PyTorch-layout conv weights (O, I, kH, kW); bias=0 per module config.
    w1 = 0.1 * jax.random.normal(ks[0], (c_in, c_in, 1, K), jnp.float32)
    w2 = 0.1 * jax.random.normal(ks[1], (c_out, c_in, 1, 1), jnp.float32)
    # BatchNorm2d synthetic eval-mode params
    g1 = 1.0 + 0.1 * jax.random.normal(ks[2], (c_in,), jnp.float32)
    be1 = 0.1 * jax.random.normal(ks[3], (c_in,), jnp.float32)
    mu1 = 0.1 * jax.random.normal(ks[4], (c_in,), jnp.float32)
    v1 = 1.0 + jnp.abs(jax.random.normal(ks[5], (c_in,), jnp.float32))
    g2 = 1.0 + 0.1 * jax.random.normal(ks[6], (c_out,), jnp.float32)
    be2 = 0.1 * jax.random.normal(ks[7], (c_out,), jnp.float32)
    mu2 = 0.1 * jax.random.normal(ks[8], (c_out,), jnp.float32)
    v2 = 1.0 + jnp.abs(jax.random.normal(ks[9], (c_out,), jnp.float32))
    return (w1, w2, (g1, be1, mu1, v1), (g2, be2, mu2, v2))


def ref_forward(x_nchw, w1, w2, bn1, bn2):
    """Pure-JAX reference mirroring the PyTorch graph (NCHW convs), with the same
    bf16 quantization points as the kernel's mixed-precision path (incl. bf16 out)."""
    q = lambda a: a.astype(jnp.bfloat16).astype(jnp.float32)

    def bn(x, g, b, mu, var):
        inv = 1.0 / jnp.sqrt(var + BN_EPS)
        return (x - mu[None, :, None, None]) * (g * inv)[None, :, None, None] \
            + b[None, :, None, None]

    dn = ('NCHW', 'OIHW', 'NCHW')
    y = lax.conv_general_dilated(q(x_nchw), q(w1), (1, 1), ((0, 0), (PAD, PAD)),
                                 dimension_numbers=dn,
                                 precision=lax.Precision.HIGHEST)
    y = jnp.maximum(bn(y, *bn1), 0.0)
    y = lax.conv_general_dilated(q(y), q(w2), (1, 1), ((0, 0), (0, 0)),
                                 dimension_numbers=dn,
                                 precision=lax.Precision.HIGHEST)
    y = jnp.maximum(bn(y, *bn2), 0.0)
    return q(y)                                   # kernel writes bf16 output


if __name__ == "__main__":
    N, C_IN, H, T = 2, 16, 1, 16
    C_OUT = 32

    key = jax.random.PRNGKey(0)
    kx, kp = jax.random.split(key)
    x = jax.random.normal(kx, (N, C_IN, H, T), jnp.float32)

    w1, w2, bn1, bn2 = init_params(kp, C_IN, C_OUT)
    params = fold_params(w1, w2, bn1, bn2, T)

    fwd = jax.jit(functools.partial(temporal_branch_forward, params=params))
    y, attn_list = fwd(x)
    y = jax.block_until_ready(y)

    y_ref = jax.block_until_ready(ref_forward(x, w1, w2, bn1, bn2))
    # Tolerance covers the intended bf16 quantization points (inputs, weights with
    # folded BN scales, inter-matmul activation, output); accumulation is f32.
    np.testing.assert_allclose(np.asarray(y), np.asarray(y_ref),
                               rtol=1e-2, atol=1e-2)
    assert y.shape == (N, C_OUT, H, T)
    assert attn_list is None

    print("KERNEL_OK")
</pallas_src>

<mosaic_0001>
module attributes {stable_mosaic.version = 11 : i64} {
  func.func @temporal_branch_kernel(%arg0: i32, %arg1: memref<2x256xbf16, #tpu.memory_space<vmem>>, %arg2: memref<256x256xbf16, #tpu.memory_space<vmem>>, %arg3: memref<256x512xbf16, #tpu.memory_space<vmem>>, %arg4: memref<1x256xf32, #tpu.memory_space<vmem>>, %arg5: memref<1x512xf32, #tpu.memory_space<vmem>>, %arg6: memref<2x512xbf16, #tpu.memory_space<vmem>>) attributes {dimension_semantics = [#tpu.dimension_semantics<parallel>], iteration_bounds = array<i64: 1>, scalar_prefetch = 0 : i64, scratch_operands = 0 : i64, tpu.core_type = #tpu.core_type<tc>, window_params = [{transform_indices = @transform_0, window_bounds = array<i64: 2, 256>}, {pipeline_mode = #tpu.pipeline_mode<synchronous>, transform_indices = @transform_1, window_bounds = array<i64: 256, 256>}, {pipeline_mode = #tpu.pipeline_mode<synchronous>, transform_indices = @transform_2, window_bounds = array<i64: 256, 512>}, {pipeline_mode = #tpu.pipeline_mode<synchronous>, transform_indices = @transform_3, window_bounds = array<i64: 1, 256>}, {pipeline_mode = #tpu.pipeline_mode<synchronous>, transform_indices = @transform_4, window_bounds = array<i64: 1, 512>}, {transform_indices = @transform_5, window_bounds = array<i64: 2, 512>}]} {
    %c0 = arith.constant 0 : index
    %c0_0 = arith.constant 0 : index
    %0 = vector.load %arg1[%c0, %c0_0] : memref<2x256xbf16, #tpu.memory_space<vmem>>, vector<2x256xbf16>
    %c0_1 = arith.constant 0 : index
    %c0_2 = arith.constant 0 : index
    %1 = vector.load %arg2[%c0_1, %c0_2] : memref<256x256xbf16, #tpu.memory_space<vmem>>, vector<256x256xbf16>
    %cst = arith.constant dense<0.000000e+00> : vector<2x256xf32>
    %2 = tpu.matmul %0, %1, %cst {dimension_numbers = #tpu.dot_dimension_numbers<[1], [0], [0], [1], [0, 0, 1, 1], [], []>} : vector<2x256xbf16>, vector<256x256xbf16>, vector<2x256xf32> -> vector<2x256xf32>
    %c0_3 = arith.constant 0 : index
    %c0_4 = arith.constant 0 : index
    %3 = vector.load %arg4[%c0_3, %c0_4] : memref<1x256xf32, #tpu.memory_space<vmem>>, vector<1x256xf32>
    %4 = vector.broadcast %3 : vector<1x256xf32> to vector<2x256xf32>
    %5 = arith.addf %2, %4 : vector<2x256xf32>
    %cst_5 = arith.constant 0.000000e+00 : f32
    %6 = vector.broadcast %cst_5 : f32 to vector<2x256xf32>
    %7 = arith.maximumf %5, %6 : vector<2x256xf32>
    %8 = arith.truncf %7 : vector<2x256xf32> to vector<2x256xbf16>
    %c0_6 = arith.constant 0 : index
    %c0_7 = arith.constant 0 : index
    %9 = vector.load %arg3[%c0_6, %c0_7] : memref<256x512xbf16, #tpu.memory_space<vmem>>, vector<256x512xbf16>
    %cst_8 = arith.constant dense<0.000000e+00> : vector<2x512xf32>
    %10 = tpu.matmul %8, %9, %cst_8 {dimension_numbers = #tpu.dot_dimension_numbers<[1], [0], [0], [1], [0, 0, 1, 1], [], []>} : vector<2x256xbf16>, vector<256x512xbf16>, vector<2x512xf32> -> vector<2x512xf32>
    %c0_9 = arith.constant 0 : index
    %c0_10 = arith.constant 0 : index
    %11 = vector.load %arg5[%c0_9, %c0_10] : memref<1x512xf32, #tpu.memory_space<vmem>>, vector<1x512xf32>
    %12 = vector.broadcast %11 : vector<1x512xf32> to vector<2x512xf32>
    %13 = arith.addf %10, %12 : vector<2x512xf32>
    %cst_11 = arith.constant 0.000000e+00 : f32
    %14 = vector.broadcast %cst_11 : f32 to vector<2x512xf32>
    %15 = arith.maximumf %13, %14 : vector<2x512xf32>
    %16 = arith.truncf %15 : vector<2x512xf32> to vector<2x512xbf16>
    %c0_12 = arith.constant 0 : index
    %c0_13 = arith.constant 0 : index
    %17 = vector.load %arg6[%c0_12, %c0_13] : memref<2x512xbf16, #tpu.memory_space<vmem>>, vector<2x512xbf16>
    tpu.vector_store %arg6[%c0_12, %c0_13], %16 {strides = array<i32>} : memref<2x512xbf16, #tpu.memory_space<vmem>>, vector<2x512xbf16>,
    return
  }
  func.func @transform_0(%arg0: i32) -> (i32, i32) {
    %c0_i32 = arith.constant 0 : i32
    %c0_i32_0 = arith.constant 0 : i32
    return %arg0, %c0_i32 : i32, i32
  }
  func.func @transform_1(%arg0: i32) -> (i32, i32) {
    %c0_i32 = arith.constant 0 : i32
    %c0_i32_0 = arith.constant 0 : i32
    %c0_i32_1 = arith.constant 0 : i32
    return %c0_i32, %c0_i32_0 : i32, i32
  }
  func.func @transform_2(%arg0: i32) -> (i32, i32) {
    %c0_i32 = arith.constant 0 : i32
    %c0_i32_0 = arith.constant 0 : i32
    %c0_i32_1 = arith.constant 0 : i32
    return %c0_i32, %c0_i32_0 : i32, i32
  }
  func.func @transform_3(%arg0: i32) -> (i32, i32) {
    %c0_i32 = arith.constant 0 : i32
    %c0_i32_0 = arith.constant 0 : i32
    %c0_i32_1 = arith.constant 0 : i32
    return %c0_i32, %c0_i32_0 : i32, i32
  }
  func.func @transform_4(%arg0: i32) -> (i32, i32) {
    %c0_i32 = arith.constant 0 : i32
    %c0_i32_0 = arith.constant 0 : i32
    %c0_i32_1 = arith.constant 0 : i32
    return %c0_i32, %c0_i32_0 : i32, i32
  }
  func.func @transform_5(%arg0: i32) -> (i32, i32) {
    %c0_i32 = arith.constant 0 : i32
    %c0_i32_0 = arith.constant 0 : i32
    return %arg0, %c0_i32 : i32, i32
  }
}

</mosaic_0001>

<bundles_post_ra>
// kernel: temporal_branch_forward.1
= control target key start
LH: loop header
LB: loop body
LE: loop exit
PB: predicated region body
PF: predicated region fallthrough
CT: control target
= control target key end

     0   :  { %v55_v9 = vlaneseq  ;;  %v1070_v10 = vmov 1966171168   ;;  %s1419_s1 = inlined_call_operand.vmem [shape: bf16[256,256], index: 1, kind: input, shape index: {}]   ;;  %s1420_s0 = inlined_call_operand.vmem [shape: bf16[2,256], index: 0, kind: input, shape index: {}]   ;;  %s1421_s2 = inlined_call_operand.vmem [shape: bf16[256,512], index: 2, kind: input, shape index: {}]   ;;  %s1422_s3 = inlined_call_operand.vmem [shape: f32[1,256], index: 3, kind: input, shape index: {}]   ;;  %s1423_s4 = inlined_call_operand.vmem [shape: f32[1,512], index: 4, kind: input, shape index: {}]   ;;  %s1424_s5 = inlined_call_operand.vmem [shape: bf16[2,512], index: 5, kind: output, shape index: {}]  }
   0x1   :  { %v926_v0 = vld [vmem:[%s1419_s1 + $0x4] ss:$8 sps:$4 sm:$0xff]   ;;  %v928_v1 = vld [vmem:[%s1419_s1] ss:$8 sps:$4 sm:$0xff]   ;;  %v929_v2 = vld [vmem:[%s1419_s1 + $0x14] ss:$8 sps:$4 sm:$0xff]   ;;  %v75_v11 = vunpack.c.l.s4 %v1070_v10 }
   0x2   :  { %250 = vmatprep.subr.bf16.mxu0 %v926_v0  ;;  %v931_v3 = vld [vmem:[%s1419_s1 + $0x10] ss:$8 sps:$4 sm:$0xff]   ;;  %v932_v4 = vld [vmem:[%s1419_s1 + $0x24] ss:$8 sps:$4 sm:$0xff]   ;;  %v934_v5 = vld [vmem:[%s1419_s1 + $0x20] ss:$8 sps:$4 sm:$0xff]  }
   0x3   :  { %251 = vmatpush1.bf16.msra.mxu0 %v928_v1  ;;  %v935_v6 = vld [vmem:[%s1419_s1 + $0x34] ss:$8 sps:$4 sm:$0xff]   ;;  %v937_v7 = vld [vmem:[%s1419_s1 + $0x30] ss:$8 sps:$4 sm:$0xff]   ;;  %v938_v8 = vld [vmem:[%s1419_s1 + $0x44] ss:$8 sps:$4 sm:$0xff]   ;;  %v76_v15 = vunpack.c.0.s8 %v75_v11 }
   0x4   :  { %252 = vmatprep.subr.bf16.mxu0 %v929_v2  ;;  %v940_v12 = vld [vmem:[%s1419_s1 + $0x40] ss:$8 sps:$4 sm:$0xff]   ;;  %v941_v13 = vld [vmem:[%s1419_s1 + $0x54] ss:$8 sps:$4 sm:$0xff]   ;;  %v1134_v14 = vshrl.u32 %v55_v9, 7 }
   0x5   :  { %v943_v16 = vld [vmem:[%s1419_s1 + $0x50] ss:$8 sps:$4 sm:$0xff]   ;;  %v944_v17 = vld [vmem:[%s1419_s1 + $0x64] ss:$8 sps:$4 sm:$0xff]   ;;  %v946_v22 = vld [vmem:[%s1419_s1 + $0x60] ss:$8 sps:$4 sm:$0xff]  }
   0x6   :  { %v1143_v18 = vsub.s32 %v76_v15, %v1134_v14  ;;  %v1148_v19 = vld.sshfl [vmem:[%s1420_s0] sm:$0x11 pattern:$0x75316420]  ;;  %v974_v21 = vld [vmem:[%s1421_s2 + $0x4] ss:$16 sps:$4 sm:$0xff]  }
   0x7   :  { %253 = vmatpush1.bf16.msra.mxu0 %v931_v3  ;;  %v73_v20 = vcombine.high %v1148_v19, %v1148_v19  ;;  %v947_v23 = vld [vmem:[%s1419_s1 + $0x74] ss:$8 sps:$4 sm:$0xff]   ;;  %701 = vmatprep.subr.bf16.mxu1 %v974_v21  ;;  %v979_v25 = vld [vmem:[%s1421_s2] ss:$16 sps:$4 sm:$0xff]   ;;  %v950_v28 = vld [vmem:[%s1419_s1 + $0x84] ss:$8 sps:$4 sm:$0xff]  }
   0x8   :  { %254 = vmatprep.subr.bf16.mxu0 %v932_v4  ;;  %v980_v26 = vld [vmem:[%s1421_s2 + $0x24] ss:$16 sps:$4 sm:$0xff]   ;;  %v949_v27 = vld [vmem:[%s1419_s1 + $0x70] ss:$8 sps:$4 sm:$0xff]   ;;  %702 = vmatpush1.bf16.msra.mxu1 %v979_v25  ;;  %v952_v31 = vld [vmem:[%s1419_s1 + $0x80] ss:$8 sps:$4 sm:$0xff]   ;;  %v80_v63 = vrot.slane %v1148_v19, %v1143_v18 }
   0x9   :  { %v87_v24 = vrot.slane %v73_v20, %v1143_v18  ;;  %703 = vmatprep.subr.bf16.mxu1 %v980_v26  ;;  %v985_v29 = vld [vmem:[%s1421_s2 + $0x20] ss:$16 sps:$4 sm:$0xff]   ;;  %v986_v30 = vld [vmem:[%s1421_s2 + $0x44] ss:$16 sps:$4 sm:$0xff]   ;;  %v978_v61 = vld [vmem:[%s1421_s2 + $0xc] ss:$16 sps:$4 sm:$0xff]  }
   0xa   :  { %v991_v32 = vld [vmem:[%s1421_s2 + $0x40] ss:$16 sps:$4 sm:$0xff]   ;;  %v992_v33 = vld [vmem:[%s1421_s2 + $0x64] ss:$16 sps:$4 sm:$0xff]   ;;  %v976_v1 = vld [vmem:[%s1421_s2 + $0x8] ss:$16 sps:$4 sm:$0xff]  }
   0xb   :  { %255 = vmatpush1.bf16.msra.mxu0 %v934_v5  ;;  %282 = vmatprep.mubr.bf16.mxu0 %v87_v24  ;;  %v953_v34 = vld [vmem:[%s1419_s1 + $0x94] ss:$8 sps:$4 sm:$0xff]   ;;  %v955_v35 = vld [vmem:[%s1419_s1 + $0x90] ss:$8 sps:$4 sm:$0xff]   ;;  %v956_v38 = vld [vmem:[%s1419_s1 + $0xa4] ss:$8 sps:$4 sm:$0xff]  }
   0xc   :  { %256 = vmatprep.subr.bf16.mxu0 %v935_v6  ;;  %704 = vmatpush1.bf16.msra.mxu1 %v985_v29  ;;  %v997_v36 = vld [vmem:[%s1421_s2 + $0x60] ss:$16 sps:$4 sm:$0xff]   ;;  %v998_v37 = vld [vmem:[%s1421_s2 + $0x84] ss:$16 sps:$4 sm:$0xff]   ;;  %v984_v3 = vld [vmem:[%s1421_s2 + $0x2c] ss:$16 sps:$4 sm:$0xff]  }
   0xd   :  { %705 = vmatprep.subr.bf16.mxu1 %v986_v30  ;;  %v958_v39 = vld [vmem:[%s1419_s1 + $0xa0] ss:$8 sps:$4 sm:$0xff]   ;;  %v1004_v41 = vld [vmem:[%s1421_s2 + $0xa4] ss:$16 sps:$4 sm:$0xff]   ;;  %v961_v43 = vld [vmem:[%s1419_s1 + $0xb0] ss:$8 sps:$4 sm:$0xff]  }
   0xe   :  { %v1003_v40 = vld [vmem:[%s1421_s2 + $0x80] ss:$16 sps:$4 sm:$0xff]   ;;  %v959_v42 = vld [vmem:[%s1419_s1 + $0xb4] ss:$8 sps:$4 sm:$0xff]   ;;  %v962_v46 = vld [vmem:[%s1419_s1 + $0xc4] ss:$8 sps:$4 sm:$0xff]  }
   0xf   :  { %257 = vmatpush1.bf16.msra.mxu0 %v937_v7  ;;  %v1009_v44 = vld [vmem:[%s1421_s2 + $0xa0] ss:$16 sps:$4 sm:$0xff]   ;;  %v1010_v45 = vld [vmem:[%s1421_s2 + $0xc4] ss:$16 sps:$4 sm:$0xff]   ;;  %v982_v5 = vld [vmem:[%s1421_s2 + $0x28] ss:$16 sps:$4 sm:$0xff]  }
  0x10   :  { %258 = vmatprep.subr.bf16.mxu0 %v938_v8  ;;  %706 = vmatpush1.bf16.msra.mxu1 %v991_v32  ;;  %v964_v47 = vld [vmem:[%s1419_s1 + $0xc0] ss:$8 sps:$4 sm:$0xff]   ;;  %v1016_v49 = vld [vmem:[%s1421_s2 + $0xe4] ss:$16 sps:$4 sm:$0xff]   ;;  %v967_v51 = vld [vmem:[%s1419_s1 + $0xd0] ss:$8 sps:$4 sm:$0xff]  }
  0x11   :  { %707 = vmatprep.subr.bf16.mxu1 %v992_v33  ;;  %v1015_v48 = vld [vmem:[%s1421_s2 + $0xc0] ss:$16 sps:$4 sm:$0xff]   ;;  %v965_v50 = vld [vmem:[%s1419_s1 + $0xd4] ss:$8 sps:$4 sm:$0xff]   ;;  %v968_v54 = vld [vmem:[%s1419_s1 + $0xe4] ss:$8 sps:$4 sm:$0xff]  }
  0x12   :  { %v1021_v52 = vld [vmem:[%s1421_s2 + $0xe0] ss:$16 sps:$4 sm:$0xff]   ;;  %v1022_v53 = vld [vmem:[%s1421_s2 + $0x104] ss:$16 sps:$4 sm:$0xff]   ;;  %v990_v7 = vld [vmem:[%s1421_s2 + $0x4c] ss:$16 sps:$4 sm:$0xff]  }
  0x13   :  { %259 = vmatpush1.bf16.msra.mxu0 %v940_v12  ;;  %v970_v55 = vld [vmem:[%s1419_s1 + $0xe0] ss:$8 sps:$4 sm:$0xff]   ;;  %v1028_v57 = vld [vmem:[%s1421_s2 + $0x124] ss:$16 sps:$4 sm:$0xff]   ;;  %v973_v59 = vld [vmem:[%s1419_s1 + $0xf0] ss:$8 sps:$4 sm:$0xff]  }
  0x14   :  { %260 = vmatprep.subr.bf16.mxu0 %v941_v13  ;;  %708 = vmatpush1.bf16.msra.mxu1 %v997_v36  ;;  %v1027_v56 = vld [vmem:[%s1421_s2 + $0x100] ss:$16 sps:$4 sm:$0xff]   ;;  %v971_v58 = vld [vmem:[%s1419_s1 + $0xf4] ss:$8 sps:$4 sm:$0xff]   ;;  %v988_v9 = vld [vmem:[%s1421_s2 + $0x48] ss:$16 sps:$4 sm:$0xff]  }
  0x15   :  { %709 = vmatprep.subr.bf16.mxu1 %v998_v37  ;;  %v1033_v60 = vld [vmem:[%s1421_s2 + $0x120] ss:$16 sps:$4 sm:$0xff]   ;;  %v1034_v62 = vld [vmem:[%s1421_s2 + $0x144] ss:$16 sps:$4 sm:$0xff]   ;;  %v996_v11 = vld [vmem:[%s1421_s2 + $0x6c] ss:$16 sps:$4 sm:$0xff]  }
  0x16   :  { %v1039_v0 = vld [vmem:[%s1421_s2 + $0x140] ss:$16 sps:$4 sm:$0xff]   ;;  %v1040_v2 = vld [vmem:[%s1421_s2 + $0x164] ss:$16 sps:$4 sm:$0xff]   ;;  %v994_v13 = vld [vmem:[%s1421_s2 + $0x68] ss:$16 sps:$4 sm:$0xff]  }
  0x17   :  { %261 = vmatpush1.bf16.msra.mxu0 %v943_v16  ;;  %v1045_v4 = vld [vmem:[%s1421_s2 + $0x160] ss:$16 sps:$4 sm:$0xff]   ;;  %v1046_v6 = vld [vmem:[%s1421_s2 + $0x184] ss:$16 sps:$4 sm:$0xff]   ;;  %v1002_v15 = vld [vmem:[%s1421_s2 + $0x8c] ss:$16 sps:$4 sm:$0xff]  }
  0x18   :  { %262 = vmatprep.subr.bf16.mxu0 %v944_v17  ;;  %710 = vmatpush1.bf16.msra.mxu1 %v1003_v40  ;;  %v1051_v8 = vld [vmem:[%s1421_s2 + $0x180] ss:$16 sps:$4 sm:$0xff]   ;;  %v1052_v10 = vld [vmem:[%s1421_s2 + $0x1a4] ss:$16 sps:$4 sm:$0xff]   ;;  %v1000_v16 = vld [vmem:[%s1421_s2 + $0x88] ss:$16 sps:$4 sm:$0xff]  }
  0x19   :  { %711 = vmatprep.subr.bf16.mxu1 %v1004_v41  ;;  %v1057_v12 = vld [vmem:[%s1421_s2 + $0x1a0] ss:$16 sps:$4 sm:$0xff]   ;;  %v1008_v17 = vld [vmem:[%s1421_s2 + $0xac] ss:$16 sps:$4 sm:$0xff]   ;;  %v1006_v19 = vld [vmem:[%s1421_s2 + $0xa8] ss:$16 sps:$4 sm:$0xff]  }
  0x1a   :  { %v1014_v20 = vld [vmem:[%s1421_s2 + $0xcc] ss:$16 sps:$4 sm:$0xff]   ;;  %v1012_v21 = vld [vmem:[%s1421_s2 + $0xc8] ss:$16 sps:$4 sm:$0xff]   ;;  %v1058_v36 = vld [vmem:[%s1421_s2 + $0x1c4] ss:$16 sps:$4 sm:$0xff]  }
  0x1b   :  { %263 = vmatpush1.bf16.msra.mxu0 %v946_v22  ;;  %v1020_v22 = vld [vmem:[%s1421_s2 + $0xec] ss:$16 sps:$4 sm:$0xff]   ;;  %v1024_v25 = vld [vmem:[%s1421_s2 + $0x108] ss:$16 sps:$4 sm:$0xff]   ;;  %v1064_v40 = vld [vmem:[%s1421_s2 + $0x1e4] ss:$16 sps:$4 sm:$0xff]  }
  0x1c   :  { %264 = vmatprep.subr.bf16.mxu0 %v947_v23  ;;  %712 = vmatpush1.bf16.msra.mxu1 %v1009_v44  ;;  %v1018_v23 = vld [vmem:[%s1421_s2 + $0xe8] ss:$16 sps:$4 sm:$0xff]   ;;  %v1026_v24 = vld [vmem:[%s1421_s2 + $0x10c] ss:$16 sps:$4 sm:$0xff]   ;;  %v57_v44 = vsub.s32 0, %v1134_v14 }
  0x1d   :  { %713 = vmatprep.subr.bf16.mxu1 %v1010_v45  ;;  %v1032_v26 = vld [vmem:[%s1421_s2 + $0x12c] ss:$16 sps:$4 sm:$0xff]   ;;  %v1036_v29 = vld [vmem:[%s1421_s2 + $0x148] ss:$16 sps:$4 sm:$0xff]   ;;  %v53_v45 = vld [vmem:[%s1422_s3] sm:$0x3] }
  0x1e   :  { %v1044_v30 = vld [vmem:[%s1421_s2 + $0x16c] ss:$16 sps:$4 sm:$0xff]   ;;  %v1048_v33 = vld [vmem:[%s1421_s2 + $0x188] ss:$16 sps:$4 sm:$0xff]  }
  0x1f   :  { %265 = vmatpush1.bf16.msra.mxu0 %v949_v27  ;;  %v1030_v27 = vld [vmem:[%s1421_s2 + $0x128] ss:$16 sps:$4 sm:$0xff]   ;;  %v1050_v32 = vld [vmem:[%s1421_s2 + $0x18c] ss:$16 sps:$4 sm:$0xff]  }
  0x20   :  { %266 = vmatprep.subr.bf16.mxu0 %v950_v28  ;;  %714 = vmatpush1.bf16.msra.mxu1 %v1015_v48  ;;  %v1038_v28 = vld [vmem:[%s1421_s2 + $0x14c] ss:$16 sps:$4 sm:$0xff]  }
  0x21   :  { %715 = vmatprep.subr.bf16.mxu1 %v1016_v49  ;;  %v1062_v37 = vld [vmem:[%s1421_s2 + $0x1cc] ss:$16 sps:$4 sm:$0xff]  }
  0x22   :  { %v1068_v41 = vld [vmem:[%s1421_s2 + $0x1ec] ss:$16 sps:$4 sm:$0xff]  }
  0x23   :  { %267 = vmatpush1.bf16.msra.mxu0 %v952_v31  ;;  %v1042_v31 = vld [vmem:[%s1421_s2 + $0x168] ss:$16 sps:$4 sm:$0xff]  }
  0x24   :  { %268 = vmatprep.subr.bf16.mxu0 %v953_v34  ;;  %716 = vmatpush1.bf16.msra.mxu1 %v1021_v52  ;;  %v1056_v34 = vld [vmem:[%s1421_s2 + $0x1ac] ss:$16 sps:$4 sm:$0xff]  }
  0x25   :  { %717 = vmatprep.subr.bf16.mxu1 %v1022_v53 }
  0x27   :  { %269 = vmatpush1.bf16.msra.mxu0 %v955_v35  ;;  %v1054_v35 = vld [vmem:[%s1421_s2 + $0x1a8] ss:$16 sps:$4 sm:$0xff]  }
  0x28   :  { %270 = vmatprep.subr.bf16.mxu0 %v956_v38  ;;  %718 = vmatpush1.bf16.msra.mxu1 %v1027_v56  ;;  %v1060_v38 = vld [vmem:[%s1421_s2 + $0x1c8] ss:$16 sps:$4 sm:$0xff]  }
  0x29   :  { %719 = vmatprep.subr.bf16.mxu1 %v1028_v57 }
  0x2b   :  { %271 = vmatpush1.bf16.msra.mxu0 %v958_v39  ;;  %v1063_v39 = vld [vmem:[%s1421_s2 + $0x1c0] ss:$16 sps:$4 sm:$0xff]  }
  0x2c   :  { %272 = vmatprep.subr.bf16.mxu0 %v959_v42  ;;  %720 = vmatpush1.bf16.msra.mxu1 %v1033_v60  ;;  %v1066_v42 = vld [vmem:[%s1421_s2 + $0x1e8] ss:$16 sps:$4 sm:$0xff]   ;;  %v359_v60 = vld [vmem:[%s1423_s4] sm:$0xf] }
  0x2d   :  { %721 = vmatprep.subr.bf16.mxu1 %v1034_v62  ;;  %v364_v62 = vrot.slane %v359_v60, %v57_v44 }
  0x2f   :  { %273 = vmatpush1.bf16.msra.mxu0 %v961_v43  ;;  %v1069_v43 = vld [vmem:[%s1421_s2 + $0x1e0] ss:$16 sps:$4 sm:$0xff]  }
  0x30   :  { %274 = vmatprep.subr.bf16.mxu0 %v962_v46  ;;  %722 = vmatpush1.bf16.msra.mxu1 %v1039_v0  ;;  %v61_v46 = vsub.s32 1, %v1134_v14 }
  0x31   :  { %723 = vmatprep.subr.bf16.mxu1 %v1040_v2 }
  0x32   :  { %v62_v48 = vrot.slane %v53_v45, %v61_v46  ;;  %v368_v0 = vrot.slane %v359_v60, %v61_v46 }
  0x33   :  { %275 = vmatpush1.bf16.msra.mxu0 %v964_v47  ;;  %v58_v47 = vrot.slane %v53_v45, %v57_v44 }
  0x34   :  { %276 = vmatprep.subr.bf16.mxu0 %v965_v50  ;;  %724 = vmatpush1.bf16.msra.mxu1 %v1045_v4 }
  0x35   :  { %725 = vmatprep.subr.bf16.mxu1 %v1046_v6 }
  0x37   :  { %277 = vmatpush1.bf16.msra.mxu0 %v967_v51 }
  0x38   :  { %278 = vmatprep.subr.bf16.mxu0 %v968_v54  ;;  %726 = vmatpush1.bf16.msra.mxu1 %v1051_v8 }
  0x39   :  { %727 = vmatprep.subr.bf16.mxu1 %v1052_v10 }
  0x3b   :  { %279 = vmatpush1.bf16.msra.mxu0 %v970_v55 }
  0x3c   :  { %280 = vmatprep.subr.bf16.mxu0 %v971_v58  ;;  %728 = vmatpush1.bf16.msra.mxu1 %v1057_v12 }
  0x3d   :  { %729 = vmatprep.subr.bf16.mxu1 %v1058_v36 }
  0x3f   :  { %281 = vmatpush1.bf16.msra.mxu0 %v973_v59  ;;  %v371_v59 = vsub.s32 2, %v1134_v14 }
  0x40   :  { %742 = vmatprep.subr.bf16.mxu0 %v978_v61  ;;  %730 = vmatpush1.bf16.msra.mxu1 %v1063_v39  ;;  %v375_v61 = vsub.s32 3, %v1134_v14 }
  0x41   :  { %731 = vmatprep.subr.bf16.mxu1 %v1064_v40 }
  0x42   :  { %283 = vmatmul.mubr.bf16.vlgmr.msra.gmra.mrb[0].mxu0 %v80_v63  ;;  %v372_v63 = vrot.slane %v359_v60, %v371_v59 }
  0x43   :  { %743 = vmatpush1.bf16.msra.mxu0 %v976_v1  ;;  %v376_v1 = vrot.slane %v359_v60, %v375_v61 }
  0x44   :  { %744 = vmatprep.subr.bf16.mxu0 %v984_v3  ;;  %732 = vmatpush1.bf16.msra.mxu1 %v1069_v43 }
  0x47   :  { %745 = vmatpush1.bf16.msra.mxu0 %v982_v5 }
  0x48   :  { %746 = vmatprep.subr.bf16.mxu0 %v990_v7 }
  0x4b   :  { %747 = vmatpush1.bf16.msra.mxu0 %v988_v9 }
  0x4c   :  { %748 = vmatprep.subr.bf16.mxu0 %v996_v11 }
  0x4f   :  { %749 = vmatpush1.bf16.msra.mxu0 %v994_v13 }
  0x50   :  { %750 = vmatprep.subr.bf16.mxu0 %v1002_v15 }
  0x53   :  { %751 = vmatpush1.bf16.msra.mxu0 %v1000_v16 }
  0x54   :  { %752 = vmatprep.subr.bf16.mxu0 %v1008_v17 }
  0x57   :  { %753 = vmatpush1.bf16.msra.mxu0 %v1006_v19 }
  0x58   :  { %754 = vmatprep.subr.bf16.mxu0 %v1014_v20 }
  0x5b   :  { %755 = vmatpush1.bf16.msra.mxu0 %v1012_v21 }
  0x5c   :  { %756 = vmatprep.subr.bf16.mxu0 %v1020_v22 }
  0x5f   :  { %757 = vmatpush1.bf16.msra.mxu0 %v1018_v23 }
  0x60   :  { %758 = vmatprep.subr.bf16.mxu0 %v1026_v24 }
  0x63   :  { %759 = vmatpush1.bf16.msra.mxu0 %v1024_v25 }
  0x64   :  { %760 = vmatprep.subr.bf16.mxu0 %v1032_v26 }
  0x67   :  { %761 = vmatpush1.bf16.msra.mxu0 %v1030_v27 }
  0x68   :  { %762 = vmatprep.subr.bf16.mxu0 %v1038_v28 }
  0x6b   :  { %763 = vmatpush1.bf16.msra.mxu0 %v1036_v29 }
  0x6c   :  { %764 = vmatprep.subr.bf16.mxu0 %v1044_v30 }
  0x6f   :  { %765 = vmatpush1.bf16.msra.mxu0 %v1042_v31 }
  0x70   :  { %766 = vmatprep.subr.bf16.mxu0 %v1050_v32 }
  0x73   :  { %767 = vmatpush1.bf16.msra.mxu0 %v1048_v33 }
  0x74   :  { %768 = vmatprep.subr.bf16.mxu0 %v1056_v34 }
  0x77   :  { %769 = vmatpush1.bf16.msra.mxu0 %v1054_v35 }
  0x78   :  { %770 = vmatprep.subr.bf16.mxu0 %v1062_v37 }
  0x7b   :  { %771 = vmatpush1.bf16.msra.mxu0 %v1060_v38 }
  0x7c   :  { %772 = vmatprep.subr.bf16.mxu0 %v1068_v41 }
  0x7f   :  { %773 = vmatpush1.bf16.msra.mxu0 %v1066_v42 }
 0x115   :  { %v284_v49 = vpop.f32.mrb[0].mxu0 }
 0x116   :  { %v285_v50 = vadd.f32 %v284_v49, %v58_v47  ;;  %v286_v51 = vpop.f32.mrb[1].mxu0 }
 0x117   :  { %v287_v52 = vadd.f32 %v286_v51, %v62_v48  ;;  %v288_v53 = vpop.f32.mrb[2].mxu0 }
 0x118   :  { %v291_v54 = vmax.f32 %v285_v50, 0.0  ;;  %v289_v55 = vpop.f32.mrb[3].mxu0 }
 0x119   :  { %v292_v56 = vmax.f32 %v287_v52, 0.0 }
 0x11a   :  { %v293_v58 = vpack.c.bf16 %v291_v54, %v291_v54 }
 0x11b   :  { %v294_v57 = vpack.c.bf16 %v292_v56, %v292_v56 }
 0x11d   :  { %733 = vmatprep.mubr.bf16.mxu1 %v294_v57  ;;  %774 = vmatprep.mubr.bf16.mxu0 %v294_v57 }
 0x11e   :  { %734 = vmatmul.mubr.bf16.vlgmr.msra.gmra.mrb[0].mxu1 %v293_v58  ;;  %775 = vmatmul.mubr.bf16.vlgmr.msra.gmra.mrb[4].mxu0 %v293_v58 }
 0x1f1   :  { %v735_v2 = vpop.f32.mrb[0].mxu1  ;;  %v776_v3 = vpop.f32.mrb[4].mxu0 }
 0x1f2   :  { %v736_v4 = vadd.f32 %v735_v2, %v364_v62  ;;  %v777_v5 = vadd.f32 %v776_v3, %v372_v63  ;;  %v737_v6 = vpop.f32.mrb[1].mxu1  ;;  %v778_v7 = vpop.f32.mrb[5].mxu0 }
 0x1f3   :  { %v738_v8 = vadd.f32 %v737_v6, %v368_v0  ;;  %v779_v9 = vadd.f32 %v778_v7, %v376_v1  ;;  %v739_v10 = vpop.f32.mrb[2].mxu1  ;;  %v780_v11 = vpop.f32.mrb[6].mxu0 }
 0x1f4   :  { %v783_v12 = vmax.f32 %v736_v4, 0.0  ;;  %v785_v13 = vmax.f32 %v777_v5, 0.0  ;;  %v740_v15 = vpop.f32.mrb[3].mxu1  ;;  %v781_v16 = vpop.f32.mrb[7].mxu0 }
 0x1f5   :  { %v784_v17 = vmax.f32 %v738_v8, 0.0  ;;  %v786_v14 = vmax.f32 %v779_v9, 0.0 }
 0x1f7   :  { %v922_v19 = vpack.c.bf16 %v784_v17, %v783_v12  ;;  %v923_v20 = vpack.c.bf16 %v786_v14, %v785_v13 }
 0x1f9   :  { %v803_v21 = vrot.slane %v922_v19, %v1143_v18  ;;  %v810_v22 = vrot.slane %v923_v20, %v1143_v18 }
 0x1fb   :  { %v811_v23 = vcombine.low %v803_v21, %v810_v22 }
 0x1fd   :  { %924 = vst.sshfl [vmem:[%s1424_s5] sm:$0x55 pattern:$0x73625140] %v811_v23 }

</bundles_post_ra>
